<compile_context>
chip_gen: v6e
topology: v6e:2x2x1
jax: 0.10.0
libtpu: 0.0.40
codegen_flags: <defaults>
</compile_context>

<pallas_src>
import math

import jax
import jax.numpy as jnp
from jax import lax
from jax.experimental import pallas as pl
from jax.experimental.pallas import tpu as pltpu


def _round_up(v, m):
    return ((v + m - 1) // m) * m


def _tpu_hw_info():
    """Returns (vmem_capacity_bytes, is_multi_tensorcore) with safe fallbacks."""
    vmem = None
    try:
        vmem = int(getattr(pltpu.get_tpu_info(), "vmem_capacity_bytes"))
    except Exception:
        vmem = None
    kind = ""
    try:
        kind = jax.devices()[0].device_kind.lower()
    except Exception:
        kind = ""
    is_v7 = ("v7" in kind) or ("7x" in kind)
    if vmem is None:
        if is_v7:
            vmem = 64 << 20                 # v7x: 64 MiB per TensorCore
        elif ("v5" in kind) or ("v6" in kind):
            vmem = 128 << 20                # v5e / v6e: 128 MiB
        else:
            vmem = 64 << 20                 # conservative default
    return vmem, is_v7


def _make_kernel(has_bias, acc_in_out, x_cast_dtype):
    def kernel(*refs):
        x_ref, w_ref = refs[0], refs[1]
        pos = 2
        bias_ref = None
        if has_bias:
            bias_ref = refs[pos]
            pos += 1
        o_ref = refs[pos]
        acc_ref = o_ref if acc_in_out else refs[pos + 1]

        j = pl.program_id(1)          # output-column (out_features) tile
        k = pl.program_id(2)          # reduction (in_features) tile
        nk = pl.num_programs(2)

        @pl.when(k == 0)
        def _():
            acc_ref[...] = jnp.zeros_like(acc_ref)

        x = x_ref[...]                                            # (tm, tk)
        xm = x if x_cast_dtype is None else x.astype(x_cast_dtype)
        # out = x @ W.T : contract x's last dim against W's in_features dim.
        contrib = lax.dot_general(
            xm, w_ref[...],
            dimension_numbers=(((1,), (1,)), ((), ())),
            preferred_element_type=jnp.float32)                   # (tm, tn)
        acc_ref[...] += contrib.astype(acc_ref.dtype)

        # Residual "+ x": the x block at reduction step k == j is exactly the
        # slice matching this output-column tile (tn == tk by construction).
        # Uses the original-precision x, so W == 0 gives exact identity.
        @pl.when(k == j)
        def _():
            acc_ref[...] += x.astype(acc_ref.dtype)

        @pl.when(k == nk - 1)
        def _():
            if has_bias:
                acc_ref[...] += bias_ref[...].astype(acc_ref.dtype)   # (1,tn) bcast
            if not acc_in_out:
                o_ref[...] = acc_ref[...].astype(o_ref.dtype)

    return kernel


def full_rank_adversary(x, W, bias=None, *, compute_dtype=jnp.bfloat16):
    """x: (..., dim); W: (dim, dim) PyTorch layout; bias: (dim,) or None.

    compute_dtype: matmul operand precision (accumulation is always f32,
    residual/bias always original precision).  None => exact full precision.
    """
    orig_shape = x.shape
    dim = orig_shape[-1]
    assert W.shape == (dim, dim), "weight must be (dim, dim)"
    M = math.prod(orig_shape[:-1]) if orig_shape[:-1] else 1
    x2 = x.reshape(M, dim)
    out_dtype = x.dtype

    # --- matmul operand precision -------------------------------------------
    cdt = None if compute_dtype is None else jnp.dtype(compute_dtype)
    if cdt is not None and jnp.dtype(W.dtype).itemsize > cdt.itemsize:
        Wk = W.astype(cdt)                  # one-off downcast: halves W HBM bytes
    else:
        Wk = W
    x_cast_dtype = cdt if (cdt is not None
                           and jnp.dtype(x2.dtype).itemsize > cdt.itemsize) else None

    has_bias = bias is not None
    acc_in_out = jnp.dtype(out_dtype) == jnp.dtype(jnp.float32)

    x_item = jnp.dtype(x2.dtype).itemsize
    w_item = jnp.dtype(Wk.dtype).itemsize
    out_item = jnp.dtype(out_dtype).itemsize

    # --- generation-aware VMEM budget ----------------------------------------
    vmem_cap, multi_tc = _tpu_hw_info()
    budget = (vmem_cap * 3) // 4            # 48 MiB on v7x, 96 MiB on v5e/v6e

    # --- tile selection -------------------------------------------------------
    # sublane multiple for the row dim of x / out tiles (8 f32, 16 bf16, 32 i8)
    sub = max(8, 32 // max(1, min(x_item, out_item)))
    tm_cap = max(sub, _round_up(min(M, 2048), sub))

    tnk_cands = [t for t in (1024, 512, 256, 128) if dim % t == 0] or [dim]
    tm_cands = [t for t in (2048, 1024, 512, 256, 128) if t <= tm_cap] or [tm_cap]

    def bufbytes(tm_, tnk_):
        # double-buffered x, W, out tiles (+ bias, + f32 scratch if needed)
        b = 2 * tm_ * tnk_ * x_item + 2 * tnk_ * tnk_ * w_item + 2 * tm_ * tnk_ * out_item
        if has_bias:
            b += 2 * tnk_ * 4
        if not acc_in_out:
            b += tm_ * tnk_ * 4
        return b + (2 << 20)                # Mosaic internal scratch headroom

    tm, tnk = tm_cands[-1], tnk_cands[-1]
    done = False
    for tnk_c in tnk_cands:                 # largest dim tile first
        for tm_c in tm_cands:               # then largest row tile that fits
            if bufbytes(tm_c, tnk_c) <= budget:
                tm, tnk = tm_c, tnk_c
                done = True
                break
        if done:
            break

    # v7x has 2 TensorCores: make sure the "parallel" grid has >= 2 blocks.
    if multi_tc:
        for _ in range(8):
            if pl.cdiv(M, tm) * (dim // tnk) >= 2:
                break
            if tnk > 128 and dim % (tnk // 2) == 0 and (tnk // 2) % 128 == 0:
                tnk //= 2
            elif tm > sub:
                tm = _round_up(max(sub, tm // 2), sub)
            else:
                break

    Mp = _round_up(M, tm)
    if Mp != M:
        x2 = jnp.pad(x2, ((0, Mp - M), (0, 0)))

    grid = (Mp // tm, dim // tnk, dim // tnk)   # tn == tk (required by k==j fold)

    in_specs = [
        pl.BlockSpec((tm, tnk), lambda i, j, k: (i, k)),      # x rows / K-slice
        pl.BlockSpec((tnk, tnk), lambda i, j, k: (j, k)),     # W[out-slice, in-slice]
    ]
    args = [x2, Wk]
    if has_bias:
        in_specs.append(pl.BlockSpec((1, tnk), lambda i, j, k: (0, j)))
        args.append(bias.astype(jnp.float32).reshape(1, dim))

    scratch_shapes = [] if acc_in_out else [pltpu.VMEM((tm, tnk), jnp.float32)]

    vmem_limit = int(min(budget, max(32 << 20, bufbytes(tm, tnk))))

    out = pl.pallas_call(
        _make_kernel(has_bias, acc_in_out, x_cast_dtype),
        out_shape=jax.ShapeDtypeStruct((Mp, dim), out_dtype),
        grid_spec=pltpu.PrefetchScalarGridSpec(
            num_scalar_prefetch=0,
            grid=grid,
            in_specs=in_specs,
            out_specs=pl.BlockSpec((tm, tnk), lambda i, j, k: (i, j)),
            scratch_shapes=scratch_shapes,
        ),
        compiler_params=pltpu.CompilerParams(
            dimension_semantics=("parallel", "parallel", "arbitrary"),
            vmem_limit_bytes=vmem_limit),
    )(*args)

    if Mp != M:
        out = out[:M]
    return out.reshape(orig_shape)


if __name__ == "__main__":
    # Small shapes consistent with the module: tokens of hidden size `dim`.
    batch, seq, dim = 2, 8, 256

    key = jax.random.PRNGKey(0)
    kx, kw, kb = jax.random.split(key, 3)
    x = jax.random.normal(kx, (batch, seq, dim), dtype=jnp.float32)

    # Case 1: module default -- zero-initialized weight, bias=False.
    # Exact identity even on the bf16 fast path (residual uses f32 x).
    W0 = jnp.zeros((dim, dim), jnp.float32)
    out0 = jax.block_until_ready(full_rank_adversary(x, W0))
    assert out0.shape == x.shape
    assert jnp.allclose(out0, x, atol=1e-6), "zero-weight path should be identity"

    # Reference for the trained-weight cases.
    bound = 1.0 / (dim ** 0.5)
    W = jax.random.uniform(kw, (dim, dim), jnp.float32, -bound, bound)
    b = jax.random.uniform(kb, (dim,), jnp.float32, -bound, bound)
    ref = x @ W.T + b + x

    # Case 2: exact f32 compute path.
    out_f32 = jax.block_until_ready(full_rank_adversary(x, W, b, compute_dtype=None))
    assert jnp.allclose(out_f32, ref, atol=1e-4, rtol=1e-4), "f32 path mismatch"

    # Case 3: default fast path (bf16 matmul operands, f32 accumulation).
    out_fast = jax.block_until_ready(full_rank_adversary(x, W, b))
    assert jnp.allclose(out_fast, ref, atol=3e-2, rtol=3e-2), "bf16 path mismatch"

    print("KERNEL_OK")
</pallas_src>

<mosaic_0001>
module attributes {stable_mosaic.version = 11 : i64} {
  func.func @kernel(%arg0: i32, %arg1: i32, %arg2: i32, %arg3: memref<16x256xf32, #tpu.memory_space<vmem>>, %arg4: memref<256x256xbf16, #tpu.memory_space<vmem>>, %arg5: memref<16x256xf32, #tpu.memory_space<vmem>>) attributes {dimension_semantics = [#tpu.dimension_semantics<parallel>, #tpu.dimension_semantics<parallel>, #tpu.dimension_semantics<arbitrary>], iteration_bounds = array<i64: 1, 1, 1>, scalar_prefetch = 0 : i64, scratch_operands = 0 : i64, tpu.core_type = #tpu.core_type<tc>, window_params = [{transform_indices = @transform_0, window_bounds = array<i64: 16, 256>}, {transform_indices = @transform_1, window_bounds = array<i64: 256, 256>}, {transform_indices = @transform_2, window_bounds = array<i64: 16, 256>}]} {
    %c0_i32 = arith.constant 0 : i32
    %0 = arith.cmpi eq, %arg2, %c0_i32 : i32
    %1 = arith.extui %0 : i1 to i32
    %c0_i32_0 = arith.constant 0 : i32
    %2 = arith.cmpi ne, %1, %c0_i32_0 : i32
    scf.if %2 {
      %cst_9 = arith.constant 0.000000e+00 : f32
      %13 = vector.broadcast %cst_9 : f32 to vector<16x256xf32>
      %c0_10 = arith.constant 0 : index
      %c0_11 = arith.constant 0 : index
      %14 = vector.load %arg5[%c0_10, %c0_11] : memref<16x256xf32, #tpu.memory_space<vmem>>, vector<16x256xf32>
      tpu.vector_store %arg5[%c0_10, %c0_11], %13 {strides = array<i32>} : memref<16x256xf32, #tpu.memory_space<vmem>>, vector<16x256xf32>,
    } else {
    }
    %c0 = arith.constant 0 : index
    %c0_1 = arith.constant 0 : index
    %3 = vector.load %arg3[%c0, %c0_1] : memref<16x256xf32, #tpu.memory_space<vmem>>, vector<16x256xf32>
    %4 = arith.truncf %3 : vector<16x256xf32> to vector<16x256xbf16>
    %c0_2 = arith.constant 0 : index
    %c0_3 = arith.constant 0 : index
    %5 = vector.load %arg4[%c0_2, %c0_3] : memref<256x256xbf16, #tpu.memory_space<vmem>>, vector<256x256xbf16>
    %cst = arith.constant dense<0.000000e+00> : vector<16x256xf32>
    %6 = tpu.matmul %4, %5, %cst {dimension_numbers = #tpu.dot_dimension_numbers<[1], [1], [0], [0], [0, 0, 1, 0], [], []>} : vector<16x256xbf16>, vector<256x256xbf16>, vector<16x256xf32> -> vector<16x256xf32>
    %c0_4 = arith.constant 0 : index
    %c0_5 = arith.constant 0 : index
    %7 = vector.load %arg5[%c0_4, %c0_5] : memref<16x256xf32, #tpu.memory_space<vmem>>, vector<16x256xf32>
    %8 = arith.addf %7, %6 : vector<16x256xf32>
    %c0_6 = arith.constant 0 : index
    %c0_7 = arith.constant 0 : index
    %9 = vector.load %arg5[%c0_6, %c0_7] : memref<16x256xf32, #tpu.memory_space<vmem>>, vector<16x256xf32>
    tpu.vector_store %arg5[%c0_6, %c0_7], %8 {strides = array<i32>} : memref<16x256xf32, #tpu.memory_space<vmem>>, vector<16x256xf32>,
    %10 = arith.cmpi eq, %arg2, %arg1 : i32
    %11 = arith.extui %10 : i1 to i32
    %c0_i32_8 = arith.constant 0 : i32
    %12 = arith.cmpi ne, %11, %c0_i32_8 : i32
    scf.if %12 {
      %c0_9 = arith.constant 0 : index
      %c0_10 = arith.constant 0 : index
      %13 = vector.load %arg5[%c0_9, %c0_10] : memref<16x256xf32, #tpu.memory_space<vmem>>, vector<16x256xf32>
      %14 = arith.addf %13, %3 : vector<16x256xf32>
      %c0_11 = arith.constant 0 : index
      %c0_12 = arith.constant 0 : index
      %15 = vector.load %arg5[%c0_11, %c0_12] : memref<16x256xf32, #tpu.memory_space<vmem>>, vector<16x256xf32>
      tpu.vector_store %arg5[%c0_11, %c0_12], %14 {strides = array<i32>} : memref<16x256xf32, #tpu.memory_space<vmem>>, vector<16x256xf32>,
    } else {
    }
    return
  }
  func.func @transform_0(%arg0: i32, %arg1: i32, %arg2: i32) -> (i32, i32) {
    %c0_i32 = arith.constant 0 : i32
    return %arg0, %arg2 : i32, i32
  }
  func.func @transform_1(%arg0: i32, %arg1: i32, %arg2: i32) -> (i32, i32) {
    %c0_i32 = arith.constant 0 : i32
    return %arg1, %arg2 : i32, i32
  }
  func.func @transform_2(%arg0: i32, %arg1: i32, %arg2: i32) -> (i32, i32) {
    %c0_i32 = arith.constant 0 : i32
    return %arg0, %arg1 : i32, i32
  }
}

</mosaic_0001>

<bundles_post_ra>
// kernel: tpu_custom_call.1
= control target key start
LH: loop header
LB: loop body
LE: loop exit
PB: predicated region body
PF: predicated region fallthrough
CT: control target
= control target key end

     0   :  { %7 = vsyncpa [#allocation3], 0  ;;  %s530_s0 = inlined_call_operand.hbm [shape: f32[16,256], index: 0, kind: input, shape index: {}]   ;;  %s531_s1 = inlined_call_operand.hbm [shape: bf16[256,256], index: 1, kind: input, shape index: {}]   ;;  %s532_s2 = inlined_call_operand.hbm [shape: f32[16,256], index: 2, kind: output, shape index: {}]  }
   0x1   :  { %8 = vsyncpa [#allocation6], 0 }
   0x2   :  { %9 = vsyncpa [#allocation4], 0  ;;  %s489_s9 = smov [#allocation2]  }
   0x3   :  { %s15_s10 = sshll.u32 %s489_s9, 4  ;;  %s16_s10 = int_to_ptr.vmem [resolvable:$true] %s15_s10 }
   0x4   :  { %s431_s11 = scalar_lea.vmem %s16_s10, 512  ;;  %p436_p1 = scmp.lt.s32.totalorder %s16_s10, %s16_s10 }
   0x5   :  { %p432_p0 = scmp.ne.s32.totalorder %s16_s10, %s431_s11  ;;  %p437_p2 = scmp.lt.s32.totalorder %s431_s11, %s431_s11 }
   0x7   :  { %p438_p3 = por %p437_p2, %p436_p1 }
   0x9   :  { %p439_p4 = pnand %p438_p3, %p432_p0 }
   0xb   :  { %442 = shalt.err (!%p439_p4)
}
   0xc   :  { %s490_s12 = smov 256   ;;  %s491_s13 = smov 16  }
   0xd   :  { %21 = dma.hbm_to_vmem [thread:$0]  %s530_s0, 512, %s16_s10, [#allocation3], %s490_s12, %s490_s12, %s491_s13  }
   0xe   :  { %s492_s16 = smov [#allocation5]  }
   0xf   :  { %s27_s17 = sshll.u32 %s492_s16, 4  ;;  %s28_s17 = int_to_ptr.vmem [resolvable:$true] %s27_s17 }
  0x10   :  { %s451_s18 = scalar_lea.vmem %s28_s17, 4096  ;;  %p456_p6 = scmp.lt.s32.totalorder %s28_s17, %s28_s17 }
  0x11   :  { %p452_p5 = scmp.ne.s32.totalorder %s28_s17, %s451_s18  ;;  %p457_p7 = scmp.lt.s32.totalorder %s451_s18, %s451_s18 }
  0x13   :  { %p458_p8 = por %p457_p7, %p456_p6 }
  0x15   :  { %p459_p9 = pnand %p458_p8, %p452_p5 }
  0x17   :  { %462 = shalt.err (!%p459_p9)
}
  0x18   :  { %s493_s19 = smov 128   ;;  %s494_s20 = smov 8  }
  0x19   :  { %33 = dma.hbm_to_vmem [thread:$0]  %s531_s1, 4096, %s28_s17, [#allocation6], %s493_s19, %s493_s19, %s494_s20  }
  0x1a   :  { %483 = dma.done.wait [#allocation3], 512  }
  0x1b   :  { %484 = vsyncadd [#allocation3], 4294966784 }
  0x1c   :  { %485 = dma.done.wait [#allocation6], 4096  }
  0x1d   :  { %486 = vsyncadd [#allocation6], 4294963200  ;;  %v375_v0 = vld [vmem:[#allocation5 + $0x74] ss:$8 sps:$4 sm:$0xff]   ;;  %v377_v1 = vld [vmem:[#allocation5 + $0x70] ss:$8 sps:$4 sm:$0xff]  }
  0x1e   :  { %246 = vmatprep.subr.bf16.mxu0 %v375_v0  ;;  %v378_v2 = vld [vmem:[#allocation5 + $0x64] ss:$8 sps:$4 sm:$0xff]   ;;  %v380_v3 = vld [vmem:[#allocation5 + $0x60] ss:$8 sps:$4 sm:$0xff]   ;;  %v381_v4 = vld [vmem:[#allocation5 + $0x54] ss:$8 sps:$4 sm:$0xff]  }
  0x1f   :  { %247 = vmatpush1.bf16.xpose.msra.mxu0 %v377_v1  ;;  %v383_v5 = vld [vmem:[#allocation5 + $0x50] ss:$8 sps:$4 sm:$0xff]   ;;  %v384_v6 = vld [vmem:[#allocation5 + $0x44] ss:$8 sps:$4 sm:$0xff]   ;;  %v386_v10 = vld [vmem:[#allocation5 + $0x40] ss:$8 sps:$4 sm:$0xff]  }
  0x20   :  { %248 = vmatprep.subr.bf16.mxu0 %v378_v2  ;;  %v49_v7 = vld [vmem:[#allocation2 + $0x8] sm:$0xff]  ;;  %v520_v8 = vld [vmem:[#allocation2 + $0x18] sm:$0xff]  ;;  %v48_v35 = vld [vmem:[#allocation2] sm:$0xff]  ;;  %s495_s0 = smov [#allocation7]  }
  0x21   :  { %v53_v9 = vpack.c.bf16 %v520_v8, %v49_v7  ;;  %v387_v11 = vld [vmem:[#allocation5 + $0x34] ss:$8 sps:$4 sm:$0xff]   ;;  %v389_v12 = vld [vmem:[#allocation5 + $0x30] ss:$8 sps:$4 sm:$0xff]   ;;  %v390_v13 = vld [vmem:[#allocation5 + $0x24] ss:$8 sps:$4 sm:$0xff]  }
  0x22   :  { %v392_v14 = vld [vmem:[#allocation5 + $0x20] ss:$8 sps:$4 sm:$0xff]   ;;  %v393_v15 = vld [vmem:[#allocation5 + $0x14] ss:$8 sps:$4 sm:$0xff]   ;;  %v395_v16 = vld [vmem:[#allocation5 + $0x10] ss:$8 sps:$4 sm:$0xff]  }
  0x23   :  { %278 = vmatprep.mubr.bf16.mxu0 %v53_v9  ;;  %v396_v17 = vld [vmem:[#allocation5 + $0x4] ss:$8 sps:$4 sm:$0xff]   ;;  %v398_v18 = vld [vmem:[#allocation5] ss:$8 sps:$4 sm:$0xff]   ;;  %v399_v19 = vld [vmem:[#allocation5 + $0xf4] ss:$8 sps:$4 sm:$0xff]  }
  0x24   :  { %v401_v20 = vld [vmem:[#allocation5 + $0xf0] ss:$8 sps:$4 sm:$0xff]   ;;  %v402_v21 = vld [vmem:[#allocation5 + $0xe4] ss:$8 sps:$4 sm:$0xff]   ;;  %v404_v22 = vld [vmem:[#allocation5 + $0xe0] ss:$8 sps:$4 sm:$0xff]  }
  0x25   :  { %v405_v23 = vld [vmem:[#allocation5 + $0xd4] ss:$8 sps:$4 sm:$0xff]   ;;  %v407_v24 = vld [vmem:[#allocation5 + $0xd0] ss:$8 sps:$4 sm:$0xff]   ;;  %v408_v25 = vld [vmem:[#allocation5 + $0xc4] ss:$8 sps:$4 sm:$0xff]  }
  0x26   :  { %v410_v26 = vld [vmem:[#allocation5 + $0xc0] ss:$8 sps:$4 sm:$0xff]   ;;  %v411_v27 = vld [vmem:[#allocation5 + $0xb4] ss:$8 sps:$4 sm:$0xff]   ;;  %v413_v28 = vld [vmem:[#allocation5 + $0xb0] ss:$8 sps:$4 sm:$0xff]  }
  0x27   :  { %249 = vmatpush1.bf16.xpose.msra.mxu0 %v380_v3  ;;  %v414_v29 = vld [vmem:[#allocation5 + $0xa4] ss:$8 sps:$4 sm:$0xff]   ;;  %v416_v30 = vld [vmem:[#allocation5 + $0xa0] ss:$8 sps:$4 sm:$0xff]   ;;  %v417_v31 = vld [vmem:[#allocation5 + $0x94] ss:$8 sps:$4 sm:$0xff]  }
  0x28   :  { %250 = vmatprep.subr.bf16.mxu0 %v381_v4  ;;  %v419_v32 = vld [vmem:[#allocation5 + $0x90] ss:$8 sps:$4 sm:$0xff]   ;;  %v420_v33 = vld [vmem:[#allocation5 + $0x84] ss:$8 sps:$4 sm:$0xff]   ;;  %v422_v34 = vld [vmem:[#allocation5 + $0x80] ss:$8 sps:$4 sm:$0xff]  }
  0x29   :  { %v50_v36 = vld [vmem:[#allocation2 + $0x10] sm:$0xff]  ;;  %s322_s1 = sshll.u32 %s495_s0, 4  ;;  %s323_s1 = int_to_ptr.vmem [resolvable:$true] %s322_s1 }
  0x2a   :  { %v52_v37 = vpack.c.bf16 %v50_v36, %v48_v35  ;;  %s463_s23 = scalar_lea.vmem %s323_s1, 512  ;;  %p468_p11 = scmp.lt.s32.totalorder %s323_s1, %s323_s1 }
  0x2b   :  { %p464_p10 = scmp.ne.s32.totalorder %s323_s1, %s463_s23  ;;  %p469_p12 = scmp.lt.s32.totalorder %s463_s23, %s463_s23 }
  0x2d   :  { %p470_p13 = por %p469_p12, %p468_p11 }
  0x2f   :  { %251 = vmatpush1.bf16.xpose.msra.mxu0 %v383_v5  ;;  %p471_p0 = pnand %p470_p13, %p464_p10 }
  0x30   :  { %252 = vmatprep.subr.bf16.mxu0 %v384_v6 }
  0x37   :  { %253 = vmatpush1.bf16.xpose.msra.mxu0 %v386_v10 }
  0x38   :  { %254 = vmatprep.subr.bf16.mxu0 %v387_v11 }
  0x3f   :  { %255 = vmatpush1.bf16.xpose.msra.mxu0 %v389_v12 }
  0x40   :  { %256 = vmatprep.subr.bf16.mxu0 %v390_v13 }
  0x47   :  { %257 = vmatpush1.bf16.xpose.msra.mxu0 %v392_v14 }
  0x48   :  { %258 = vmatprep.subr.bf16.mxu0 %v393_v15 }
  0x4f   :  { %259 = vmatpush1.bf16.xpose.msra.mxu0 %v395_v16 }
  0x50   :  { %260 = vmatprep.subr.bf16.mxu0 %v396_v17 }
  0x57   :  { %261 = vmatpush1.bf16.xpose.msra.mxu0 %v398_v18 }
  0x58   :  { %262 = vmatprep.subr.bf16.mxu0 %v399_v19 }
  0x5f   :  { %263 = vmatpush2.bf16.xpose.msra.mxu0 %v401_v20 }
  0x60   :  { %264 = vmatprep.subr.bf16.mxu0 %v402_v21 }
  0x67   :  { %265 = vmatpush2.bf16.xpose.msra.mxu0 %v404_v22 }
  0x68   :  { %266 = vmatprep.subr.bf16.mxu0 %v405_v23 }
  0x6f   :  { %267 = vmatpush2.bf16.xpose.msra.mxu0 %v407_v24 }
  0x70   :  { %268 = vmatprep.subr.bf16.mxu0 %v408_v25 }
  0x77   :  { %269 = vmatpush2.bf16.xpose.msra.mxu0 %v410_v26 }
  0x78   :  { %270 = vmatprep.subr.bf16.mxu0 %v411_v27 }
  0x7f   :  { %271 = vmatpush2.bf16.xpose.msra.mxu0 %v413_v28 }
  0x80   :  { %272 = vmatprep.subr.bf16.mxu0 %v414_v29 }
  0x87   :  { %273 = vmatpush2.bf16.xpose.msra.mxu0 %v416_v30 }
  0x88   :  { %274 = vmatprep.subr.bf16.mxu0 %v417_v31 }
  0x8f   :  { %275 = vmatpush2.bf16.xpose.msra.mxu0 %v419_v32 }
  0x90   :  { %276 = vmatprep.subr.bf16.mxu0 %v420_v33 }
  0x97   :  { %277 = vmatpush2.bf16.xpose.msra.mxu0 %v422_v34 }
  0x9e   :  { %279 = vmatmul.mubr.bf16.vlgmr.msra.gmra.mxu0 %v52_v37 }
 0x15e   :  { %v280_v38 = vpop.f32.mrf.mxu0 }
 0x15f   :  { %v309_v40 = vadd.f32 %v280_v38, %v48_v35 }
 0x160   :  { %v282_v39 = vpop.f32.mrf.mxu0 }
 0x161   :  { %v310_v42 = vadd.f32 %v282_v39, %v49_v7  ;;  %313 = vst [vmem:[#allocation7] sm:$0xff] %v309_v40 }
 0x162   :  { %v284_v41 = vpop.f32.mrf.mxu0 }
 0x163   :  { %v311_v44 = vadd.f32 %v284_v41, %v50_v36  ;;  %314 = vst [vmem:[#allocation7 + $0x8] sm:$0xff] %v310_v42 }
 0x164   :  { %v286_v43 = vpop.f32.mrf.mxu0 }
 0x165   :  { %v312_v45 = vadd.f32 %v286_v43, %v520_v8  ;;  %315 = vst [vmem:[#allocation7 + $0x10] sm:$0xff] %v311_v44 }
 0x167   :  { %316 = vst [vmem:[#allocation7 + $0x18] sm:$0xff] %v312_v45 }
 0x168   :  { %474 = shalt.err (!%p471_p0)
}
 0x169   :  { %328 = dma.vmem_to_hbm [thread:$0]  %s323_s1, 512, %s532_s2, [#allocation4], %s490_s12, %s490_s12, %s491_s13  }
 0x16a   :  { %487 = dma.done.wait [#allocation4], 512  }
 0x16b   :  { %488 = vsyncadd [#allocation4], 4294966784 }
 0x16c   :  { %332 = vsyncpa [#allocation3], 1 }
 0x16d   :  { %333 = vsyncpa [#allocation6], 1 }
 0x16e   :  { %334 = vsyncpa [#allocation4], 1 }

</bundles_post_ra>
